<compile_context>
chip_gen: v5e
topology: v5e:2x2
jax: 0.10.0
libtpu: 0.0.40
codegen_flags: <defaults>
</compile_context>

<pallas_src>
import jax
import jax.numpy as jnp
from jax.experimental import pallas as pl
from jax.experimental.pallas import tpu as pltpu

_LANES = 128
_SUBLANES = 8
_MAX_BLOCK_ROWS = 1024  # (1024,128) f32 block = 512 KiB per input


# ----------------------------------------------------------------------------
# Kernel
# ----------------------------------------------------------------------------
def _fused_loss_kernel(yp_ref, yt_ref, mu_ref, lv_ref,
                       mse_ref, kld_ref, acc_ref):
    i = pl.program_id(0)

    @pl.when(i == 0)
    def _init():
        acc_ref[...] = jnp.zeros_like(acc_ref)
        # KLD inputs are tiny latent stats: handled once, on the first step.
        mu = mu_ref[...].astype(jnp.float32)
        lv = lv_ref[...].astype(jnp.float32)
        kld_ref[0, 0] = jnp.sum(1.0 + lv - mu * mu - jnp.exp(lv))

    # Streaming MSE partial sums: pure VPU work per step (cast, sub, mul, add
    # into the VMEM accumulator).  Zero-padded tail elements contribute 0.
    d = yp_ref[...].astype(jnp.float32) - yt_ref[...].astype(jnp.float32)
    acc_ref[...] += d * d

    @pl.when(i == pl.num_programs(0) - 1)
    def _finalize():
        # Single cross-lane/sublane reduce + scalar SMEM write at the end.
        mse_ref[0, 0] = jnp.sum(acc_ref[...])


# ----------------------------------------------------------------------------
# Host-side layout helpers
# ----------------------------------------------------------------------------
def _flatten_lane_dense(x, tile_elems):
    """Flatten x to a (rows, 128) lane-dense slab in its NATIVE dtype.

    Pure reshape (no copy) when x.size is already a multiple of tile_elems;
    otherwise only the ragged tail is zero-padded ((0-0)^2 == 0 is neutral).
    """
    flat = jnp.ravel(x)
    n = flat.shape[0]
    pad = (-n) % tile_elems
    if pad:
        flat = jnp.concatenate([flat, jnp.zeros((pad,), flat.dtype)])
    return flat.reshape(-1, _LANES)


def _as_2d(x):
    """View latent stats as a small 2-D array (full-array block, no padding)."""
    if x.ndim == 2:
        return x
    if x.ndim > 2:
        return x.reshape(-1, x.shape[-1])
    return x.reshape(1, -1)


# ----------------------------------------------------------------------------
# loss_fn forward (Pallas implementation)
# ----------------------------------------------------------------------------
def loss_fn_forward(y_pred, y_true, mean, log_var, alpha):
    """Reproduces:
       RECON = mse_loss(y_pred, y_true, reduction='mean')
       KLD   = -0.5 * mean(1 + log_var - mean^2 - exp(log_var))
       return (RECON, alpha * KLD)
    """
    n_recon = y_pred.size
    n_kld = mean.size

    # --- MSE operands: lane-dense slabs with large blocks -------------------
    rows = -(-n_recon // _LANES)
    if rows <= _MAX_BLOCK_ROWS:
        block_rows = -(-rows // _SUBLANES) * _SUBLANES      # single block
    else:
        block_rows = _MAX_BLOCK_ROWS
    tile_elems = block_rows * _LANES
    yp2 = _flatten_lane_dense(y_pred, tile_elems)
    yt2 = _flatten_lane_dense(y_true, tile_elems)
    grid = (yp2.shape[0] // block_rows,)

    # --- KLD operands: tiny, passed as full-array blocks (no padding) -------
    mu2 = _as_2d(mean)
    lv2 = _as_2d(log_var)

    mse_sum, kld_sum = pl.pallas_call(
        _fused_loss_kernel,
        out_shape=(
            jax.ShapeDtypeStruct((1, 1), jnp.float32),
            jax.ShapeDtypeStruct((1, 1), jnp.float32),
        ),
        grid_spec=pltpu.PrefetchScalarGridSpec(
            num_scalar_prefetch=0,
            grid=grid,
            in_specs=[
                pl.BlockSpec((block_rows, _LANES), lambda i: (i, 0)),
                pl.BlockSpec((block_rows, _LANES), lambda i: (i, 0)),
                pl.BlockSpec(mu2.shape, lambda i: (0, 0)),   # full-array block
                pl.BlockSpec(lv2.shape, lambda i: (0, 0)),   # full-array block
            ],
            out_specs=[
                pl.BlockSpec((1, 1), lambda i: (0, 0), memory_space=pltpu.SMEM),
                pl.BlockSpec((1, 1), lambda i: (0, 0), memory_space=pltpu.SMEM),
            ],
            scratch_shapes=[pltpu.VMEM((block_rows, _LANES), jnp.float32)],
        ),
        compiler_params=pltpu.CompilerParams(
            dimension_semantics=("arbitrary",),   # reduction axis
        ),
    )(yp2, yt2, mu2, lv2)

    recon = mse_sum[0, 0] / jnp.float32(n_recon)
    kld = -0.5 * (kld_sum[0, 0] / jnp.float32(n_kld))
    # TODO(synk): on v7x, very large inputs could add a leading "parallel" grid
    # axis of size 2 (per-TensorCore partial sums) for up to ~2x on the stream.
    return recon, jnp.float32(alpha) * kld


# ----------------------------------------------------------------------------
# Main
# ----------------------------------------------------------------------------
if __name__ == "__main__":
    key = jax.random.PRNGKey(0)
    k1, k2, k3, k4 = jax.random.split(key, 4)

    # VAE-style shapes:
    #   y_pred / y_true: reconstructed images (B, C, H, W) = (2, 4, 16, 16)
    #   mean / log_var : latent stats (B, latent) = (2, 32)
    y_pred = jax.random.normal(k1, (2, 4, 16, 16), dtype=jnp.float32)
    y_true = jax.random.normal(k2, (2, 4, 16, 16), dtype=jnp.float32)
    mean = jax.random.normal(k3, (2, 32), dtype=jnp.float32)
    log_var = 0.1 * jax.random.normal(k4, (2, 32), dtype=jnp.float32)
    alpha = 0.5

    recon, weighted_kld = loss_fn_forward(y_pred, y_true, mean, log_var, alpha)
    recon = jax.block_until_ready(recon)
    weighted_kld = jax.block_until_ready(weighted_kld)

    # Pure-JAX reference check.
    recon_ref = jnp.mean((y_pred - y_true) ** 2)
    kld_ref = -0.5 * jnp.mean(1.0 + log_var - mean**2 - jnp.exp(log_var))
    assert jnp.allclose(recon, recon_ref, rtol=1e-5, atol=1e-6), (recon, recon_ref)
    assert jnp.allclose(weighted_kld, alpha * kld_ref, rtol=1e-5, atol=1e-6), (
        weighted_kld,
        alpha * kld_ref,
    )

    print("KERNEL_OK")
</pallas_src>

<mosaic_0001>
module attributes {stable_mosaic.version = 11 : i64} {
  func.func @_fused_loss_kernel(%arg0: i32, %arg1: memref<16x128xf32, #tpu.memory_space<vmem>>, %arg2: memref<16x128xf32, #tpu.memory_space<vmem>>, %arg3: memref<2x32xf32, #tpu.memory_space<vmem>>, %arg4: memref<2x32xf32, #tpu.memory_space<vmem>>, %arg5: memref<1x1xf32, #tpu.memory_space<smem>>, %arg6: memref<1x1xf32, #tpu.memory_space<smem>>, %arg7: memref<16x128xf32, #tpu.memory_space<vmem>>) attributes {dimension_semantics = [#tpu.dimension_semantics<arbitrary>], iteration_bounds = array<i64: 1>, scalar_prefetch = 0 : i64, scratch_operands = 1 : i64, tpu.core_type = #tpu.core_type<tc>, window_params = [{transform_indices = @transform_0, window_bounds = array<i64: 16, 128>}, {transform_indices = @transform_1, window_bounds = array<i64: 16, 128>}, {pipeline_mode = #tpu.pipeline_mode<synchronous>, transform_indices = @transform_2, window_bounds = array<i64: 2, 32>}, {pipeline_mode = #tpu.pipeline_mode<synchronous>, transform_indices = @transform_3, window_bounds = array<i64: 2, 32>}, {transform_indices = @transform_4, window_bounds = array<i64: 1, 1>}, {transform_indices = @transform_5, window_bounds = array<i64: 1, 1>}]} {
    %c0_i32 = arith.constant 0 : i32
    %0 = arith.cmpi eq, %arg0, %c0_i32 : i32
    %1 = arith.extui %0 : i1 to i32
    %c0_i32_0 = arith.constant 0 : i32
    %2 = arith.cmpi ne, %1, %c0_i32_0 : i32
    scf.if %2 {
      %cst = arith.constant 0.000000e+00 : f32
      %13 = vector.broadcast %cst : f32 to vector<16x128xf32>
      %c0_10 = arith.constant 0 : index
      %c0_11 = arith.constant 0 : index
      %14 = vector.load %arg7[%c0_10, %c0_11] : memref<16x128xf32, #tpu.memory_space<vmem>>, vector<16x128xf32>
      tpu.vector_store %arg7[%c0_10, %c0_11], %13 {strides = array<i32>} : memref<16x128xf32, #tpu.memory_space<vmem>>, vector<16x128xf32>,
      %c0_12 = arith.constant 0 : index
      %c0_13 = arith.constant 0 : index
      %15 = vector.load %arg3[%c0_12, %c0_13] : memref<2x32xf32, #tpu.memory_space<vmem>>, vector<2x32xf32>
      %c0_14 = arith.constant 0 : index
      %c0_15 = arith.constant 0 : index
      %16 = vector.load %arg4[%c0_14, %c0_15] : memref<2x32xf32, #tpu.memory_space<vmem>>, vector<2x32xf32>
      %cst_16 = arith.constant 1.000000e+00 : f32
      %17 = vector.broadcast %cst_16 : f32 to vector<2x32xf32>
      %18 = arith.addf %17, %16 : vector<2x32xf32>
      %19 = arith.mulf %15, %15 : vector<2x32xf32>
      %20 = arith.subf %18, %19 : vector<2x32xf32>
      %21 = math.exp %16 : vector<2x32xf32>
      %22 = arith.subf %20, %21 : vector<2x32xf32>
      %23 = vector.shape_cast %22 : vector<2x32xf32> to vector<1x2x32xf32>
      %cst_17 = arith.constant dense<0.000000e+00> : vector<1xf32>
      %24 = vector.multi_reduction <add>, %23, %cst_17 [1, 2] : vector<1x2x32xf32> to vector<1xf32>
      %25 = vector.shape_cast %24 : vector<1xf32> to vector<1x1x1xf32>
      %26 = vector.extract %25[0, 0, 0] : f32 from vector<1x1x1xf32>
      %c0_18 = arith.constant 0 : index
      %c0_19 = arith.constant 0 : index
      %27 = memref.load %arg6[%c0_18, %c0_19] : memref<1x1xf32, #tpu.memory_space<smem>>
      memref.store %26, %arg6[%c0_18, %c0_19] : memref<1x1xf32, #tpu.memory_space<smem>>
    } else {
    }
    %c0 = arith.constant 0 : index
    %c0_1 = arith.constant 0 : index
    %3 = vector.load %arg1[%c0, %c0_1] : memref<16x128xf32, #tpu.memory_space<vmem>>, vector<16x128xf32>
    %c0_2 = arith.constant 0 : index
    %c0_3 = arith.constant 0 : index
    %4 = vector.load %arg2[%c0_2, %c0_3] : memref<16x128xf32, #tpu.memory_space<vmem>>, vector<16x128xf32>
    %5 = arith.subf %3, %4 : vector<16x128xf32>
    %c0_4 = arith.constant 0 : index
    %c0_5 = arith.constant 0 : index
    %6 = vector.load %arg7[%c0_4, %c0_5] : memref<16x128xf32, #tpu.memory_space<vmem>>, vector<16x128xf32>
    %7 = arith.mulf %5, %5 : vector<16x128xf32>
    %8 = arith.addf %6, %7 : vector<16x128xf32>
    %c0_6 = arith.constant 0 : index
    %c0_7 = arith.constant 0 : index
    %9 = vector.load %arg7[%c0_6, %c0_7] : memref<16x128xf32, #tpu.memory_space<vmem>>, vector<16x128xf32>
    tpu.vector_store %arg7[%c0_6, %c0_7], %8 {strides = array<i32>} : memref<16x128xf32, #tpu.memory_space<vmem>>, vector<16x128xf32>,
    %c0_i32_8 = arith.constant 0 : i32
    %10 = arith.cmpi eq, %arg0, %c0_i32_8 : i32
    %11 = arith.extui %10 : i1 to i32
    %c0_i32_9 = arith.constant 0 : i32
    %12 = arith.cmpi ne, %11, %c0_i32_9 : i32
    scf.if %12 {
      %c0_10 = arith.constant 0 : index
      %c0_11 = arith.constant 0 : index
      %13 = vector.load %arg7[%c0_10, %c0_11] : memref<16x128xf32, #tpu.memory_space<vmem>>, vector<16x128xf32>
      %14 = vector.shape_cast %13 : vector<16x128xf32> to vector<1x16x128xf32>
      %cst = arith.constant dense<0.000000e+00> : vector<1xf32>
      %15 = vector.multi_reduction <add>, %14, %cst [1, 2] : vector<1x16x128xf32> to vector<1xf32>
      %16 = vector.shape_cast %15 : vector<1xf32> to vector<1x1x1xf32>
      %17 = vector.extract %16[0, 0, 0] : f32 from vector<1x1x1xf32>
      %c0_12 = arith.constant 0 : index
      %c0_13 = arith.constant 0 : index
      %18 = memref.load %arg5[%c0_12, %c0_13] : memref<1x1xf32, #tpu.memory_space<smem>>
      memref.store %17, %arg5[%c0_12, %c0_13] : memref<1x1xf32, #tpu.memory_space<smem>>
    } else {
    }
    return
  }
  func.func @transform_0(%arg0: i32) -> (i32, i32) {
    %c0_i32 = arith.constant 0 : i32
    %c0_i32_0 = arith.constant 0 : i32
    return %arg0, %c0_i32 : i32, i32
  }
  func.func @transform_1(%arg0: i32) -> (i32, i32) {
    %c0_i32 = arith.constant 0 : i32
    %c0_i32_0 = arith.constant 0 : i32
    return %arg0, %c0_i32 : i32, i32
  }
  func.func @transform_2(%arg0: i32) -> (i32, i32) {
    %c0_i32 = arith.constant 0 : i32
    %c0_i32_0 = arith.constant 0 : i32
    %c0_i32_1 = arith.constant 0 : i32
    return %c0_i32, %c0_i32_0 : i32, i32
  }
  func.func @transform_3(%arg0: i32) -> (i32, i32) {
    %c0_i32 = arith.constant 0 : i32
    %c0_i32_0 = arith.constant 0 : i32
    %c0_i32_1 = arith.constant 0 : i32
    return %c0_i32, %c0_i32_0 : i32, i32
  }
  func.func @transform_4(%arg0: i32) -> (i32, i32) {
    %c0_i32 = arith.constant 0 : i32
    %c0_i32_0 = arith.constant 0 : i32
    %c0_i32_1 = arith.constant 0 : i32
    return %c0_i32, %c0_i32_0 : i32, i32
  }
  func.func @transform_5(%arg0: i32) -> (i32, i32) {
    %c0_i32 = arith.constant 0 : i32
    %c0_i32_0 = arith.constant 0 : i32
    %c0_i32_1 = arith.constant 0 : i32
    return %c0_i32, %c0_i32_0 : i32, i32
  }
}

</mosaic_0001>

<bundles_post_ra>
// kernel: tpu_custom_call.1
= control target key start
LH: loop header
LB: loop body
LE: loop exit
PB: predicated region body
PF: predicated region fallthrough
CT: control target
= control target key end

     0   :  { %11 = vsyncpa [#allocation4], 0  ;;  %s327_s0 = inlined_call_operand.hbm [shape: f32[16,128], index: 0, kind: input, shape index: {}]   ;;  %s328_s1 = inlined_call_operand.hbm [shape: f32[16,128], index: 1, kind: input, shape index: {}]   ;;  %s329_s2 = inlined_call_operand.hbm [shape: f32[2,32], index: 2, kind: input, shape index: {}]   ;;  %s330_s3 = inlined_call_operand.vmem [shape: f32[2,32], index: 3, kind: input, shape index: {}]   ;;  %s331_s4 = inlined_call_operand.hbm [shape: f32[1,1], index: 4, kind: output, shape index: {0}]   ;;  %s332_s5 = inlined_call_operand.hbm [shape: f32[1,1], index: 5, kind: output, shape index: {1}]  }
   0x1   :  { %12 = vsyncpa [#allocation7], 0 }
   0x2   :  { %13 = vsyncpa [#allocation5], 0 }
   0x3   :  { %14 = vsyncpa [#allocation11], 0  ;;  %s32_s20 = sshll.u32 %s328_s1, 4  ;;  %s272_s21 = smov [#allocation6]   ;;  %s33_s20 = int_to_ptr.hbm [resolvable:$true] %s32_s20 }
   0x4   :  { %s34_s22 = sshll.u32 %s272_s21, 4  ;;  %s19_s25 = sshll.u32 %s327_s0, 4  ;;  %s35_s22 = int_to_ptr.vmem [resolvable:$true] %s34_s22  ;;  %s20_s25 = int_to_ptr.hbm [resolvable:$true] %s19_s25 }
   0x5   :  { %s273_s26 = smov 128   ;;  %s274_s27 = smov 8  }
   0x6   :  { %40 = dma.hbm_to_vmem [thread:$0]  %s33_s20, 256, %s35_s22, [#allocation7], %s273_s26, %s273_s26, %s274_s27  }
   0x7   :  { %s275_s28 = smov [#allocation3]   ;;  %s46_s7 = sshll.u32 %s329_s2, 4  ;;  %s47_s7 = int_to_ptr.hbm [resolvable:$true] %s46_s7 }
   0x8   :  { %s21_s29 = sshll.u32 %s275_s28, 4  ;;  %s276_s1 = smov [#allocation8]   ;;  %s22_s29 = int_to_ptr.vmem [resolvable:$true] %s21_s29 }
   0x9   :  { %27 = dma.hbm_to_vmem [thread:$0]  %s20_s25, 256, %s22_s29, [#allocation4], %s273_s26, %s273_s26, %s274_s27  }
   0xa   :  { %s48_s8 = sshll.u32 %s276_s1, 4  ;;  %s49_s8 = int_to_ptr.vmem [resolvable:$true] %s48_s8 }
   0xb   :  { %51 = dma.hbm_to_vmem [thread:$0]  %s47_s7, 32, %s49_s8, [#allocation7]  }
   0xc   :  { %264 = dma.done.wait [#allocation4], 256  }
   0xd   :  { %265 = vsyncadd [#allocation4], 4294967040 }
   0xe   :  { %266 = dma.done.wait [#allocation7], 288  }
   0xf   :  { %267 = vsyncadd [#allocation7], 4294967008  ;;  %v72_v0 = vld [vmem:[#allocation8] sm:$0x3]  ;;  %v94_v7 = vld [vmem:[#allocation3 + $0x8] sm:$0xff]  ;;  %vm80_vm0 = vcmask 254976  }
  0x10   :  { %v73_v1 = vld [vmem:[%s330_s3] sm:$0x3]  ;;  %v75_v4 = vmul.f32 %v72_v0, %v72_v0  ;;  %v95_v8 = vld [vmem:[#allocation6] sm:$0xff]  ;;  %v96_v9 = vld [vmem:[#allocation6 + $0x8] sm:$0xff]  ;;  %s138_s10 = sshll.u32 %s332_s5, 4  ;;  %s277_s12 = smov [#allocation10]   ;;  %s139_s10 = int_to_ptr.hbm [resolvable:$true] %s138_s10 }
  0x11   :  { %v77_v2 = vmul.f32 1.442695, %v73_v1  ;;  %v74_v3 = vadd.f32 1.0, %v73_v1  ;;  %v93_v5 = vld [vmem:[#allocation3] sm:$0xff]  ;;  %v98_v12 = vsub.f32 %v94_v7, %v96_v9  ;;  %s129_s15 = sshll.u32 %s331_s4, 4  ;;  %s278_s17 = smov [#allocation9]   ;;  %s130_s15 = int_to_ptr.hbm [resolvable:$true] %s129_s15 }
  0x12   :  { %v97_v11 = vsub.f32 %v93_v5, %v95_v8 }
  0x13   :  { %166 = vpow2.f32 %v77_v2  ;;  %v76_v6 = vsub.f32 %v74_v3, %v75_v4  ;;  %v102_v16 = vmul.f32 %v98_v12, %v98_v12 }
  0x14   :  { %v101_v15 = vmul.f32 %v97_v11, %v97_v11 }
  0x16   :  { %v112_v17 = vadd.f32 %v102_v16, %v101_v15 }
  0x19   :  { %v167_v10 = vpop.eup %166 }
  0x1a   :  { %v79_v13 = vsub.f32 %v76_v6, %v167_v10 }
  0x1c   :  { %v81_v14 = vsel %vm80_vm0, %v79_v13, 0.0 }
  0x1d   :  { %82 = vadd.xlane.f32.xlu0 %v81_v14 }
  0x25   :  { %113 = vadd.xlane.f32.xlu0 %v112_v17 }
  0x90   :  { %v83_v18 = vpop.xlane.xlu0 %82 }
  0x91   :  { %v84_v19 = vrot.slane %v83_v18, 4 }
  0x93   :  { %v85_v20 = vadd.f32 %v84_v19, %v83_v18 }
  0x95   :  { %v86_v21 = vrot.slane %v85_v20, 2 }
  0x97   :  { %v87_v22 = vadd.f32 %v86_v21, %v85_v20 }
  0x98   :  { %v114_v23 = vpop.xlane.xlu0 %113 }
  0x99   :  { %v115_v24 = vrot.slane %v114_v23, 4  ;;  %v88_v25 = vrot.slane %v87_v22, 1 }
  0x9b   :  { %v116_v26 = vadd.f32 %v115_v24, %v114_v23  ;;  %v89_v27 = vadd.f32 %v88_v25, %v87_v22 }
  0x9d   :  { %v117_v28 = vrot.slane %v116_v26, 2  ;;  %155 = vpush %v89_v27 }
  0x9f   :  { %v118_v29 = vadd.f32 %v117_v28, %v116_v26 }
  0xa1   :  { %v119_v30 = vrot.slane %v118_v29, 1 }
  0xa3   :  { %v120_v31 = vadd.f32 %v119_v30, %v118_v29 }
  0xa5   :  { %157 = vpush %v120_v31 }
  0xce   :  { %s156_s11 = spop %155 }
  0xcf   :  { %92 = sst [smem:[#allocation10]] %s156_s11 }
  0xd0   :  { %141 = dma.smem_to_hbm %s277_s12, 16, %s139_s10, [#allocation11]  }
  0xd6   :  { %s158_s16 = spop %157 }
  0xd7   :  { %123 = sst [smem:[#allocation9]] %s158_s16 }
  0xd8   :  { %132 = dma.smem_to_hbm %s278_s17, 16, %s130_s15, [#allocation5]  }
  0xd9   :  { %268 = dma.done.wait [#allocation5], 16  }
  0xda   :  { %269 = vsyncadd [#allocation5], 4294967280 }
  0xdb   :  { %270 = dma.done.wait [#allocation11], 16  }
  0xdc   :  { %271 = vsyncadd [#allocation11], 4294967280 }
  0xdd   :  { %150 = sfence }
  0xde   :  { %151 = vsyncpa [#allocation4], 1 }
  0xdf   :  { %152 = vsyncpa [#allocation7], 1 }
  0xe0   :  { %153 = vsyncpa [#allocation5], 1 }
  0xe1   :  { %154 = vsyncpa [#allocation11], 1 }

</bundles_post_ra>
